<compile_context>
chip_gen: v7x
topology: tpu7x:2x2x1
jax: 0.10.0
libtpu: 0.0.40
codegen_flags: <defaults>
</compile_context>

<pallas_src>
import functools
import math

import jax
import jax.numpy as jnp
from jax.experimental import pallas as pl
from jax.experimental.pallas import tpu as pltpu


# ----------------------------------------------------------------------------
# tiling helpers
# ----------------------------------------------------------------------------
def _row_tile(M, cap=512):
    """Largest row tile <= cap that divides M (falls back to M)."""
    if M <= cap:
        return M
    t = cap - (cap % 8)
    while t >= 8:
        if M % t == 0:
            return t
        t -= 8
    return M


def _kv_tile(Lk, cap=256):
    """Key-length tile: multiple of 128 dividing Lk, else the full Lk."""
    if Lk <= cap or Lk % 128 != 0:
        return Lk
    t = max((min(cap, Lk) // 128) * 128, 128)
    while Lk % t != 0:
        t -= 128
    return t


# ----------------------------------------------------------------------------
# Linear kernel (optional fused input-add, optional ReLU)
# ----------------------------------------------------------------------------
def _linear_kernel(*refs, activation, has_add):
    if has_add:
        x_ref, x2_ref, w_ref, b_ref, o_ref = refs
        x = x_ref[...].astype(jnp.float32) + x2_ref[...].astype(jnp.float32)
    else:
        x_ref, w_ref, b_ref, o_ref = refs
        x = x_ref[...].astype(jnp.float32)
    y = jnp.dot(x, w_ref[...], preferred_element_type=jnp.float32) + b_ref[...]
    if activation == "relu":
        y = jnp.maximum(y, 0.0)
    o_ref[...] = y.astype(o_ref.dtype)


def linear(x, w, b, activation=None, x2=None):
    """y = (x [+ x2]) @ w + b ;  w stored (in, out)."""
    M, K = x.shape
    N = w.shape[1]
    tile_m = _row_tile(M)
    in_specs = [pl.BlockSpec((tile_m, K), lambda i: (i, 0))]
    inputs = [x]
    if x2 is not None:
        in_specs.append(pl.BlockSpec((tile_m, K), lambda i: (i, 0)))
        inputs.append(x2)
    in_specs += [pl.BlockSpec((K, N), lambda i: (0, 0)),
                 pl.BlockSpec((1, N), lambda i: (0, 0))]
    inputs += [w, b]
    return pl.pallas_call(
        functools.partial(_linear_kernel, activation=activation,
                          has_add=x2 is not None),
        grid=(M // tile_m,),
        in_specs=in_specs,
        out_specs=pl.BlockSpec((tile_m, N), lambda i: (i, 0)),
        out_shape=jax.ShapeDtypeStruct((M, N), x.dtype),
        compiler_params=pltpu.CompilerParams(dimension_semantics=("parallel",)),
    )(*inputs)


# ----------------------------------------------------------------------------
# Dual linear: ya = (x + x2) @ wa + ba ;  yb = x @ wb + bb   (one kernel)
# Used for self-attn QK/V projections and image-CA K/V projections.
# ----------------------------------------------------------------------------
def _dual_linear_kernel(x_ref, x2_ref, wa_ref, ba_ref, wb_ref, bb_ref,
                        oa_ref, ob_ref):
    x = x_ref[...].astype(jnp.float32)
    xa = x + x2_ref[...].astype(jnp.float32)
    oa_ref[...] = (jnp.dot(xa, wa_ref[...], preferred_element_type=jnp.float32)
                   + ba_ref[...]).astype(oa_ref.dtype)
    ob_ref[...] = (jnp.dot(x, wb_ref[...], preferred_element_type=jnp.float32)
                   + bb_ref[...]).astype(ob_ref.dtype)


def dual_linear(x, x2, wa, ba, wb, bb):
    M, K = x.shape
    Na = wa.shape[1]
    Nb = wb.shape[1]
    tile_m = _row_tile(M)
    return pl.pallas_call(
        _dual_linear_kernel,
        grid=(M // tile_m,),
        in_specs=[
            pl.BlockSpec((tile_m, K), lambda i: (i, 0)),
            pl.BlockSpec((tile_m, K), lambda i: (i, 0)),
            pl.BlockSpec((K, Na), lambda i: (0, 0)),
            pl.BlockSpec((1, Na), lambda i: (0, 0)),
            pl.BlockSpec((K, Nb), lambda i: (0, 0)),
            pl.BlockSpec((1, Nb), lambda i: (0, 0)),
        ],
        out_specs=(pl.BlockSpec((tile_m, Na), lambda i: (i, 0)),
                   pl.BlockSpec((tile_m, Nb), lambda i: (i, 0))),
        out_shape=(jax.ShapeDtypeStruct((M, Na), x.dtype),
                   jax.ShapeDtypeStruct((M, Nb), x.dtype)),
        compiler_params=pltpu.CompilerParams(dimension_semantics=("parallel",)),
    )(x, x2, wa, ba, wb, bb)


# ----------------------------------------------------------------------------
# Fused  (x @ w + b) + residual -> LayerNorm (norm3) -> LayerNorm (decoder norm)
# Two outputs: next-layer input and the normalized intermediate.
# ----------------------------------------------------------------------------
def _linear_add_ln2_kernel(x_ref, w_ref, b_ref, r_ref, g1_ref, be1_ref,
                           g2_ref, be2_ref, o1_ref, o2_ref, *, eps):
    y = jnp.dot(x_ref[...].astype(jnp.float32), w_ref[...],
                preferred_element_type=jnp.float32) + b_ref[...]
    y = y + r_ref[...].astype(jnp.float32)
    mu = jnp.mean(y, axis=-1, keepdims=True)
    var = jnp.mean((y - mu) ** 2, axis=-1, keepdims=True)
    y1 = (y - mu) * jax.lax.rsqrt(var + eps) * g1_ref[...] + be1_ref[...]
    o1_ref[...] = y1.astype(o1_ref.dtype)
    mu2 = jnp.mean(y1, axis=-1, keepdims=True)
    var2 = jnp.mean((y1 - mu2) ** 2, axis=-1, keepdims=True)
    y2 = (y1 - mu2) * jax.lax.rsqrt(var2 + eps) * g2_ref[...] + be2_ref[...]
    o2_ref[...] = y2.astype(o2_ref.dtype)


def linear_add_ln_dual(x, w, b, res, g1, be1, g2, be2, eps=1e-5):
    M, K = x.shape
    N = w.shape[1]
    tile_m = _row_tile(M)
    return pl.pallas_call(
        functools.partial(_linear_add_ln2_kernel, eps=eps),
        grid=(M // tile_m,),
        in_specs=[
            pl.BlockSpec((tile_m, K), lambda i: (i, 0)),
            pl.BlockSpec((K, N), lambda i: (0, 0)),
            pl.BlockSpec((1, N), lambda i: (0, 0)),
            pl.BlockSpec((tile_m, N), lambda i: (i, 0)),
            pl.BlockSpec((1, N), lambda i: (0, 0)),
            pl.BlockSpec((1, N), lambda i: (0, 0)),
            pl.BlockSpec((1, N), lambda i: (0, 0)),
            pl.BlockSpec((1, N), lambda i: (0, 0)),
        ],
        out_specs=(pl.BlockSpec((tile_m, N), lambda i: (i, 0)),
                   pl.BlockSpec((tile_m, N), lambda i: (i, 0))),
        out_shape=(jax.ShapeDtypeStruct((M, N), x.dtype),
                   jax.ShapeDtypeStruct((M, N), x.dtype)),
        compiler_params=pltpu.CompilerParams(dimension_semantics=("parallel",)),
    )(x, w, b, res, g1, be1, g2, be2)


# ----------------------------------------------------------------------------
# Multi-head attention: flash-style kernel, all heads per grid step, online
# softmax in VMEM scratch, in-kernel additive masks.  The output projection,
# residual add and LayerNorm are fused into the finalize step.
# ----------------------------------------------------------------------------
def _mha_fused_kernel(*refs, mode, num_heads, scale, has_kpm, has_am,
                      d_model, eps):
    n_tensors = 2 if mode in ("qk_fused", "kv_fused") else 3
    n_in = n_tensors + int(has_kpm) + int(has_am) + 5
    o_ref = refs[n_in]
    m_scr, l_scr, acc_scr = refs[n_in + 1], refs[n_in + 2], refs[n_in + 3]

    kv_step = pl.program_id(1)

    @pl.when(kv_step == 0)
    def _init():
        m_scr[...] = jnp.full_like(m_scr, -1e30)
        l_scr[...] = jnp.zeros_like(l_scr)
        acc_scr[...] = jnp.zeros_like(acc_scr)

    D = d_model
    if mode == "qk_fused":
        qk = refs[0][0].astype(jnp.float32)
        q_full, k_full = qk[:, :D], qk[:, D:]
        v_full = refs[1][0].astype(jnp.float32)
        ptr = 2
    elif mode == "kv_fused":
        q_full = refs[0][0].astype(jnp.float32)
        kvb = refs[1][0].astype(jnp.float32)
        k_full, v_full = kvb[:, :D], kvb[:, D:]
        ptr = 2
    else:
        q_full = refs[0][0].astype(jnp.float32)
        k_full = refs[1][0].astype(jnp.float32)
        v_full = refs[2][0].astype(jnp.float32)
        ptr = 3

    bias = None
    if has_kpm:
        bias = refs[ptr][0].astype(jnp.float32)          # (1, tile_k)
        ptr += 1
    if has_am:
        am = refs[ptr][0].astype(jnp.float32)            # (Lq, tile_k)
        bias = am if bias is None else bias + am
        ptr += 1

    w_o_ref, b_o_ref, res_ref, g_ref, beta_ref = refs[ptr:ptr + 5]

    q_full = q_full * scale                              # scale once for all heads
    Dh = D // num_heads
    for h in range(num_heads):
        qh = q_full[:, h * Dh:(h + 1) * Dh]
        kh = k_full[:, h * Dh:(h + 1) * Dh]
        vh = v_full[:, h * Dh:(h + 1) * Dh]
        s = jax.lax.dot_general(qh, kh, (((1,), (1,)), ((), ())),
                                preferred_element_type=jnp.float32)  # (Lq, tile_k)
        if bias is not None:
            s = s + bias
        m_prev = m_scr[h]
        l_prev = l_scr[h]
        m_new = jnp.maximum(m_prev, jnp.max(s, axis=-1, keepdims=True))
        alpha = jnp.exp(m_prev - m_new)
        p = jnp.exp(s - m_new)
        l_scr[h] = alpha * l_prev + jnp.sum(p, axis=-1, keepdims=True)
        acc_scr[h] = alpha * acc_scr[h] + jnp.dot(p, vh,
                                                  preferred_element_type=jnp.float32)
        m_scr[h] = m_new

    @pl.when(kv_step == pl.num_programs(1) - 1)
    def _finish():
        outs = []
        for h in range(num_heads):
            inv = pl.reciprocal(jnp.maximum(l_scr[h], 1e-30), approx=True)
            outs.append(acc_scr[h] * inv)
        att = jnp.concatenate(outs, axis=-1)             # (Lq, D)
        y = jnp.dot(att, w_o_ref[...], preferred_element_type=jnp.float32) + b_o_ref[...]
        y = y + res_ref[0].astype(jnp.float32)
        mu = jnp.mean(y, axis=-1, keepdims=True)
        var = jnp.mean((y - mu) ** 2, axis=-1, keepdims=True)
        yn = (y - mu) * jax.lax.rsqrt(var + eps)
        o_ref[0] = (yn * g_ref[...] + beta_ref[...]).astype(o_ref.dtype)


def attention_fused(mode, tensors, *, num_heads, d_model, w_o, b_o, res,
                    gamma, beta, key_padding_bias=None, attn_bias=None,
                    kv_block=256, eps=1e-5):
    """mode: 'qk_fused' -> (qk[B,Lq,2D], v[B,Lq,D])
             'kv_fused' -> (q[B,Lq,D], kv[B,Lk,2D])
             'separate' -> (q, k, v)
       Output = LayerNorm(res + (MHA output) @ w_o + b_o)   shape (B, Lq, D)."""
    D = d_model
    if mode == "qk_fused":
        qk, v = tensors
        B, Lq, _ = qk.shape
        Lk = Lq
        tile_k = Lk                              # K lives inside the fused block
        in_arrays = [qk, v]
        in_specs = [pl.BlockSpec((1, Lq, 2 * D), lambda b, kv: (b, 0, 0)),
                    pl.BlockSpec((1, Lk, D), lambda b, kv: (b, 0, 0))]
    elif mode == "kv_fused":
        q, kvt = tensors
        B, Lq, _ = q.shape
        Lk = kvt.shape[1]
        tile_k = _kv_tile(Lk, kv_block)
        in_arrays = [q, kvt]
        in_specs = [pl.BlockSpec((1, Lq, D), lambda b, kv: (b, 0, 0)),
                    pl.BlockSpec((1, tile_k, 2 * D), lambda b, kv: (b, kv, 0))]
    else:
        q, k, v = tensors
        B, Lq, _ = q.shape
        Lk = k.shape[1]
        tile_k = _kv_tile(Lk, kv_block)
        in_arrays = [q, k, v]
        in_specs = [pl.BlockSpec((1, Lq, D), lambda b, kv: (b, 0, 0)),
                    pl.BlockSpec((1, tile_k, D), lambda b, kv: (b, kv, 0)),
                    pl.BlockSpec((1, tile_k, D), lambda b, kv: (b, kv, 0))]

    has_kpm = key_padding_bias is not None
    has_am = attn_bias is not None
    if has_kpm:
        in_arrays.append(key_padding_bias)
        in_specs.append(pl.BlockSpec((1, 1, tile_k), lambda b, kv: (b, 0, kv)))
    if has_am:
        in_arrays.append(attn_bias)
        in_specs.append(pl.BlockSpec((1, Lq, tile_k), lambda b, kv: (0, 0, kv)))

    in_arrays += [w_o, b_o, res, gamma, beta]
    in_specs += [pl.BlockSpec((D, D), lambda b, kv: (0, 0)),
                 pl.BlockSpec((1, D), lambda b, kv: (0, 0)),
                 pl.BlockSpec((1, Lq, D), lambda b, kv: (b, 0, 0)),
                 pl.BlockSpec((1, D), lambda b, kv: (0, 0)),
                 pl.BlockSpec((1, D), lambda b, kv: (0, 0))]

    n_kv = Lk // tile_k
    Dh = D // num_heads
    kernel = functools.partial(_mha_fused_kernel, mode=mode, num_heads=num_heads,
                               scale=1.0 / math.sqrt(Dh), has_kpm=has_kpm,
                               has_am=has_am, d_model=D, eps=eps)
    return pl.pallas_call(
        kernel,
        grid=(B, n_kv),
        in_specs=in_specs,
        out_specs=pl.BlockSpec((1, Lq, D), lambda b, kv: (b, 0, 0)),
        out_shape=jax.ShapeDtypeStruct((B, Lq, D), res.dtype),
        scratch_shapes=[pltpu.VMEM((num_heads, Lq, 1), jnp.float32),
                        pltpu.VMEM((num_heads, Lq, 1), jnp.float32),
                        pltpu.VMEM((num_heads, Lq, Dh), jnp.float32)],
        compiler_params=pltpu.CompilerParams(
            dimension_semantics=("parallel", "arbitrary")),
    )(*in_arrays)


# ----------------------------------------------------------------------------
# Fused gen_sineembed_for_position + ref_point_head MLP (2 layers, ReLU)
# ----------------------------------------------------------------------------
def _sine_mlp_kernel(pos_ref, sel_ref, dscale_ref, even_ref,
                     w1_ref, b1_ref, w2_ref, b2_ref, o_ref):
    pos = pos_ref[...].astype(jnp.float32)
    coords = jnp.dot(pos, sel_ref[...], preferred_element_type=jnp.float32)  # (tm, 4P)
    t = coords * dscale_ref[...]
    emb = jnp.where(even_ref[...] > 0.0, jnp.sin(t), jnp.cos(t))
    h = jnp.dot(emb, w1_ref[...], preferred_element_type=jnp.float32) + b1_ref[...]
    h = jnp.maximum(h, 0.0)
    y = jnp.dot(h, w2_ref[...], preferred_element_type=jnp.float32) + b2_ref[...]
    o_ref[...] = y.astype(o_ref.dtype)


def sine_embed_ref_point_head(pos_flat, sel, dscale, even, w1, b1, w2, b2):
    M = pos_flat.shape[0]
    FourP = sel.shape[1]
    H1 = w1.shape[1]
    D = w2.shape[1]
    tile_m = _row_tile(M)
    return pl.pallas_call(
        _sine_mlp_kernel,
        grid=(M // tile_m,),
        in_specs=[
            pl.BlockSpec((tile_m, 4), lambda i: (i, 0)),
            pl.BlockSpec((4, FourP), lambda i: (0, 0)),
            pl.BlockSpec((1, FourP), lambda i: (0, 0)),
            pl.BlockSpec((1, FourP), lambda i: (0, 0)),
            pl.BlockSpec((FourP, H1), lambda i: (0, 0)),
            pl.BlockSpec((1, H1), lambda i: (0, 0)),
            pl.BlockSpec((H1, D), lambda i: (0, 0)),
            pl.BlockSpec((1, D), lambda i: (0, 0)),
        ],
        out_specs=pl.BlockSpec((tile_m, D), lambda i: (i, 0)),
        out_shape=jax.ShapeDtypeStruct((M, D), pos_flat.dtype),
        compiler_params=pltpu.CompilerParams(dimension_semantics=("parallel",)),
    )(pos_flat, sel, dscale, even, w1, b1, w2, b2)


# ----------------------------------------------------------------------------
# Decoder layer (GroundingDINO DeformableTransformerDecoderLayer structure)
# All tensors batch-major: tgt (B, Lq, D), memory (B, Lk, D), memory_text (B, Lt, D)
# ----------------------------------------------------------------------------
def decoder_layer_forward(p, tgt, query_pos, memory, memory_pos, memory_kpm_bias,
                          memory_text, text_kpm_bias, self_attn_bias, num_heads,
                          final_norm):
    B, Lq, D = tgt.shape
    M = B * Lq
    t2 = tgt.reshape(M, D)
    qp2 = query_pos.reshape(M, D)

    # --- self attention (fused QK(+query_pos) and V projections; out-proj +
    # residual + norm2 fused into the attention kernel) ---
    sa = p["self_attn"]
    qk, v = dual_linear(t2, qp2, sa["w_qk"], sa["b_qk"], sa["w_v"], sa["b_v"])
    t_bm = attention_fused(
        "qk_fused", (qk.reshape(B, Lq, 2 * D), v.reshape(B, Lq, D)),
        num_heads=num_heads, d_model=D, attn_bias=self_attn_bias,
        w_o=sa["w_o"], b_o=sa["b_o"], res=tgt,
        gamma=p["norm2"][0], beta=p["norm2"][1])
    t2 = t_bm.reshape(M, D)

    # --- text cross attention (fused KV projection; out-proj + residual +
    # catext_norm fused into the attention kernel) ---
    ct = p["ca_text"]
    Lt = memory_text.shape[1]
    q = linear(t2, ct["w_q"], ct["b_q"], x2=qp2).reshape(B, Lq, D)
    kv = linear(memory_text.reshape(B * Lt, D), ct["w_kv"], ct["b_kv"]).reshape(B, Lt, 2 * D)
    t_bm = attention_fused(
        "kv_fused", (q, kv), num_heads=num_heads, d_model=D,
        key_padding_bias=text_kpm_bias,
        w_o=ct["w_o"], b_o=ct["b_o"], res=t_bm,
        gamma=p["norm_text"][0], beta=p["norm_text"][1])
    t2 = t_bm.reshape(M, D)

    # --- image cross attention ---
    # TODO(synk): MSDeformAttn (deformable sampling) approximated as dense MHA
    # with positional embeddings added to the keys.
    ca = p["cross_attn"]
    Lk = memory.shape[1]
    mem2 = memory.reshape(B * Lk, D)
    q = linear(t2, ca["w_q"], ca["b_q"], x2=qp2).reshape(B, Lq, D)
    k, vv = dual_linear(mem2, memory_pos.reshape(B * Lk, D),
                        ca["w_k"], ca["b_k"], ca["w_v"], ca["b_v"])
    t_bm = attention_fused(
        "separate", (q, k.reshape(B, Lk, D), vv.reshape(B, Lk, D)),
        num_heads=num_heads, d_model=D, key_padding_bias=memory_kpm_bias,
        w_o=ca["w_o"], b_o=ca["b_o"], res=t_bm,
        gamma=p["norm1"][0], beta=p["norm1"][1])
    t2 = t_bm.reshape(M, D)

    # --- FFN: linear1+ReLU, then linear2 fused with residual + norm3 AND the
    # decoder-level intermediate norm (second output) ---
    h = linear(t2, p["lin1"][0], p["lin1"][1], activation="relu")
    t2, inter = linear_add_ln_dual(h, p["lin2"][0], p["lin2"][1], t2,
                                   p["norm3"][0], p["norm3"][1],
                                   final_norm[0], final_norm[1])

    return t2.reshape(B, Lq, D), inter.reshape(B, Lq, D)


# ----------------------------------------------------------------------------
# TransformerDecoder.forward
# ----------------------------------------------------------------------------
def transformer_decoder_forward(params, tgt, memory, *, pos, refpoints_unsigmoid,
                                valid_ratios, memory_text, text_attention_mask,
                                tgt_mask=None, memory_key_padding_mask=None,
                                level_start_index=None, spatial_shapes=None,
                                num_heads=4):
    del level_start_index, spatial_shapes          # only used by deformable sampling
    nq, bs, d_model = tgt.shape

    # switch to batch-major once (module output is (bs, nq, d) anyway)
    output = jnp.transpose(tgt, (1, 0, 2))          # (B, nq, D)
    memory_bm = jnp.transpose(memory, (1, 0, 2))    # (B, hw, D)
    pos_bm = jnp.transpose(pos, (1, 0, 2))          # (B, hw, D)
    refp_bm = jnp.transpose(refpoints_unsigmoid, (1, 0, 2))   # (B, nq, 4)

    # additive mask biases, built once (tiny), consumed in-kernel
    text_kpm_bias = None
    if text_attention_mask is not None:
        text_kpm_bias = jnp.where(text_attention_mask, -1e30, 0.0).astype(jnp.float32)[:, None, :]
    memory_kpm_bias = None
    if memory_key_padding_mask is not None:
        memory_kpm_bias = jnp.where(memory_key_padding_mask, -1e30, 0.0).astype(jnp.float32)[:, None, :]
    self_attn_bias = None
    if tgt_mask is not None:
        if tgt_mask.dtype == jnp.bool_:
            self_attn_bias = jnp.where(tgt_mask, -1e30, 0.0).astype(jnp.float32)[None]
        else:
            self_attn_bias = tgt_mask.astype(jnp.float32)[None]

    reference_points = jax.nn.sigmoid(refp_bm)      # (B, nq, 4)
    ref_points = [reference_points]
    vr = jnp.concatenate([valid_ratios, valid_ratios], axis=-1)   # (B, nlevel, 4)

    # sine-embed constants; P = d_model // 2 per coordinate
    P = d_model // 2
    idx = jnp.arange(P, dtype=jnp.float32)
    dim_t = 10000.0 ** (2.0 * jnp.floor(idx / 2.0) / P)
    dscale = jnp.tile((2.0 * math.pi) / dim_t, 4).reshape(1, 4 * P)
    even = jnp.tile((jnp.arange(P) % 2 == 0), 4).astype(jnp.float32).reshape(1, 4 * P)
    sel = jnp.zeros((4, 4 * P), jnp.float32)
    for bi, c in enumerate((1, 0, 2, 3)):           # output block order: y, x, w, h
        sel = sel.at[c, bi * P:(bi + 1) * P].set(1.0)

    w1, b1 = params["ref_point_head_l1"]
    w2, b2 = params["ref_point_head_l2"]
    final_norm = params["norm"]

    # bbox_embed is None in __init__ and query_scale is None, so
    # reference_points never change across layers -> query_pos is identical
    # for every layer; compute it ONCE (hoisted out of the layer loop).
    rp_in0 = reference_points * vr[:, 0:1, :]       # level-0 reference points (B, nq, 4)
    query_pos = sine_embed_ref_point_head(
        rp_in0.reshape(bs * nq, 4), sel, dscale, even, w1, b1, w2, b2
    ).reshape(bs, nq, d_model)                      # query_scale is None -> pos_scale = 1

    intermediate = []
    for layer_id in range(len(params["layers"])):
        output, inter = decoder_layer_forward(
            params["layers"][layer_id], output, query_pos,
            memory_bm, pos_bm, memory_kpm_bias,
            memory_text, text_kpm_bias, self_attn_bias,
            num_heads, final_norm)
        # bbox_embed is None in __init__ -> reference points are not refined.
        intermediate.append(inter)

    # already batch-major == transposed outputs of the PyTorch module
    return intermediate, ref_points


# ----------------------------------------------------------------------------
# Deterministic parameter init (synthetic weights, no checkpoint loading)
# ----------------------------------------------------------------------------
def init_linear_params(key, din, dout, scale=0.05):
    kw, kb = jax.random.split(key)
    w = jax.random.normal(kw, (din, dout), jnp.float32) * scale
    b = jax.random.normal(kb, (1, dout), jnp.float32) * scale
    return w, b


def init_self_attn_params(key, d):
    ks = jax.random.split(key, 4)
    wq, bq = init_linear_params(ks[0], d, d)
    wk, bk = init_linear_params(ks[1], d, d)
    wv, bv = init_linear_params(ks[2], d, d)
    wo, bo = init_linear_params(ks[3], d, d)
    return {"w_qk": jnp.concatenate([wq, wk], axis=1),
            "b_qk": jnp.concatenate([bq, bk], axis=1),
            "w_v": wv, "b_v": bv, "w_o": wo, "b_o": bo}


def init_ca_text_params(key, d):
    ks = jax.random.split(key, 4)
    wq, bq = init_linear_params(ks[0], d, d)
    wk, bk = init_linear_params(ks[1], d, d)
    wv, bv = init_linear_params(ks[2], d, d)
    wo, bo = init_linear_params(ks[3], d, d)
    return {"w_q": wq, "b_q": bq,
            "w_kv": jnp.concatenate([wk, wv], axis=1),
            "b_kv": jnp.concatenate([bk, bv], axis=1),
            "w_o": wo, "b_o": bo}


def init_cross_attn_params(key, d):
    ks = jax.random.split(key, 4)
    wq, bq = init_linear_params(ks[0], d, d)
    wk, bk = init_linear_params(ks[1], d, d)
    wv, bv = init_linear_params(ks[2], d, d)
    wo, bo = init_linear_params(ks[3], d, d)
    return {"w_q": wq, "b_q": bq, "w_k": wk, "b_k": bk,
            "w_v": wv, "b_v": bv, "w_o": wo, "b_o": bo}


def init_layer_params(key, d, d_ffn):
    ks = jax.random.split(key, 5)
    ones = jnp.ones((1, d), jnp.float32)
    zeros = jnp.zeros((1, d), jnp.float32)
    return {
        "self_attn": init_self_attn_params(ks[0], d),
        "ca_text": init_ca_text_params(ks[1], d),
        "cross_attn": init_cross_attn_params(ks[2], d),
        "lin1": init_linear_params(ks[3], d, d_ffn),
        "lin2": init_linear_params(ks[4], d_ffn, d),
        "norm1": (ones, zeros),
        "norm2": (ones, zeros),
        "norm3": (ones, zeros),
        "norm_text": (ones, zeros),
    }


def init_decoder_params(key, d, d_ffn, num_layers, query_dim=4):
    ks = jax.random.split(key, num_layers + 2)
    return {
        "layers": [init_layer_params(ks[i], d, d_ffn) for i in range(num_layers)],
        "ref_point_head_l1": init_linear_params(ks[-2], query_dim // 2 * d, d),
        "ref_point_head_l2": init_linear_params(ks[-1], d, d),
        "norm": (jnp.ones((1, d), jnp.float32), jnp.zeros((1, d), jnp.float32)),
    }


if __name__ == "__main__":
    key = jax.random.PRNGKey(0)
    nq, bs, d_model, nhead, d_ffn = 8, 2, 32, 4, 64
    spatial = 32
    hw = spatial * spatial          # 1024 -> exercises the Lk-tiled flash path (4 x 256)
    n_text, num_layers, n_levels = 8, 2, 1

    kp, k1, k2, k3, k4, k5, k6 = jax.random.split(key, 7)
    params = init_decoder_params(kp, d_model, d_ffn, num_layers)

    tgt = jax.random.normal(k1, (nq, bs, d_model), jnp.float32)
    memory = jax.random.normal(k2, (hw, bs, d_model), jnp.float32)
    pos = jax.random.normal(k3, (hw, bs, d_model), jnp.float32)
    refpoints_unsigmoid = jax.random.normal(k4, (nq, bs, 4), jnp.float32)
    valid_ratios = jax.random.uniform(k5, (bs, n_levels, 2), jnp.float32, 0.5, 1.0)
    memory_text = jax.random.normal(k6, (bs, n_text, d_model), jnp.float32)
    text_attention_mask = jnp.zeros((bs, n_text), dtype=bool).at[1, -2:].set(True)
    level_start_index = jnp.array([0], jnp.int32)
    spatial_shapes = jnp.array([[spatial, spatial]], jnp.int32)

    intermediate, ref_points = transformer_decoder_forward(
        params, tgt, memory,
        pos=pos,
        refpoints_unsigmoid=refpoints_unsigmoid,
        valid_ratios=valid_ratios,
        memory_text=memory_text,
        text_attention_mask=text_attention_mask,
        tgt_mask=None,
        memory_key_padding_mask=None,
        level_start_index=level_start_index,
        spatial_shapes=spatial_shapes,
        num_heads=nhead,
    )
    jax.block_until_ready((intermediate, ref_points))

    assert len(intermediate) == num_layers
    assert intermediate[0].shape == (bs, nq, d_model)
    assert len(ref_points) == 1 and ref_points[0].shape == (bs, nq, 4)
    for t in intermediate:
        assert bool(jnp.all(jnp.isfinite(t)))
    print("KERNEL_OK")
</pallas_src>

<mosaic_0001>
module attributes {stable_mosaic.version = 11 : i64} {
  func.func @_sine_mlp_kernel(%arg0: i32, %arg1: memref<16x4xf32, #tpu.memory_space<vmem>>, %arg2: memref<4x64xf32, #tpu.memory_space<vmem>>, %arg3: memref<1x64xf32, #tpu.memory_space<vmem>>, %arg4: memref<1x64xf32, #tpu.memory_space<vmem>>, %arg5: memref<64x32xf32, #tpu.memory_space<vmem>>, %arg6: memref<1x32xf32, #tpu.memory_space<vmem>>, %arg7: memref<32x32xf32, #tpu.memory_space<vmem>>, %arg8: memref<1x32xf32, #tpu.memory_space<vmem>>, %arg9: memref<16x32xf32, #tpu.memory_space<vmem>>) attributes {dimension_semantics = [#tpu.dimension_semantics<parallel>], iteration_bounds = array<i64: 1>, scalar_prefetch = 0 : i64, scratch_operands = 0 : i64, tpu.core_type = #tpu.core_type<tc>, window_params = [{transform_indices = @transform_0, window_bounds = array<i64: 16, 4>}, {pipeline_mode = #tpu.pipeline_mode<synchronous>, transform_indices = @transform_1, window_bounds = array<i64: 4, 64>}, {pipeline_mode = #tpu.pipeline_mode<synchronous>, transform_indices = @transform_2, window_bounds = array<i64: 1, 64>}, {pipeline_mode = #tpu.pipeline_mode<synchronous>, transform_indices = @transform_3, window_bounds = array<i64: 1, 64>}, {pipeline_mode = #tpu.pipeline_mode<synchronous>, transform_indices = @transform_4, window_bounds = array<i64: 64, 32>}, {pipeline_mode = #tpu.pipeline_mode<synchronous>, transform_indices = @transform_5, window_bounds = array<i64: 1, 32>}, {pipeline_mode = #tpu.pipeline_mode<synchronous>, transform_indices = @transform_6, window_bounds = array<i64: 32, 32>}, {pipeline_mode = #tpu.pipeline_mode<synchronous>, transform_indices = @transform_7, window_bounds = array<i64: 1, 32>}, {transform_indices = @transform_8, window_bounds = array<i64: 16, 32>}]} {
    %c0 = arith.constant 0 : index
    %c0_0 = arith.constant 0 : index
    %0 = vector.load %arg1[%c0, %c0_0] : memref<16x4xf32, #tpu.memory_space<vmem>>, vector<16x4xf32>
    %c0_1 = arith.constant 0 : index
    %c0_2 = arith.constant 0 : index
    %1 = vector.load %arg2[%c0_1, %c0_2] : memref<4x64xf32, #tpu.memory_space<vmem>>, vector<4x64xf32>
    %cst = arith.constant dense<0.000000e+00> : vector<16x64xf32>
    %2 = tpu.matmul %0, %1, %cst {dimension_numbers = #tpu.dot_dimension_numbers<[1], [0], [0], [1], [0, 0, 1, 1], [], []>} : vector<16x4xf32>, vector<4x64xf32>, vector<16x64xf32> -> vector<16x64xf32>
    %c0_3 = arith.constant 0 : index
    %c0_4 = arith.constant 0 : index
    %3 = vector.load %arg3[%c0_3, %c0_4] : memref<1x64xf32, #tpu.memory_space<vmem>>, vector<1x64xf32>
    %4 = vector.broadcast %3 : vector<1x64xf32> to vector<16x64xf32>
    %5 = arith.mulf %2, %4 : vector<16x64xf32>
    %c0_5 = arith.constant 0 : index
    %c0_6 = arith.constant 0 : index
    %6 = vector.load %arg4[%c0_5, %c0_6] : memref<1x64xf32, #tpu.memory_space<vmem>>, vector<1x64xf32>
    %cst_7 = arith.constant 0.000000e+00 : f32
    %7 = vector.broadcast %cst_7 : f32 to vector<1x64xf32>
    %8 = arith.cmpf ogt, %6, %7 : vector<1x64xf32>
    %9 = math.sin %5 : vector<16x64xf32>
    %10 = math.cos %5 : vector<16x64xf32>
    %11 = vector.shape_cast %8 : vector<1x64xi1> to vector<1x64xi1>
    %12 = vector.broadcast %11 : vector<1x64xi1> to vector<16x64xi1>
    %13 = arith.select %12, %9, %10 : vector<16x64xi1>, vector<16x64xf32>
    %c0_8 = arith.constant 0 : index
    %c0_9 = arith.constant 0 : index
    %14 = vector.load %arg5[%c0_8, %c0_9] : memref<64x32xf32, #tpu.memory_space<vmem>>, vector<64x32xf32>
    %cst_10 = arith.constant dense<0.000000e+00> : vector<16x32xf32>
    %15 = tpu.matmul %13, %14, %cst_10 {dimension_numbers = #tpu.dot_dimension_numbers<[1], [0], [0], [1], [0, 0, 1, 1], [], []>} : vector<16x64xf32>, vector<64x32xf32>, vector<16x32xf32> -> vector<16x32xf32>
    %c0_11 = arith.constant 0 : index
    %c0_12 = arith.constant 0 : index
    %16 = vector.load %arg6[%c0_11, %c0_12] : memref<1x32xf32, #tpu.memory_space<vmem>>, vector<1x32xf32>
    %17 = vector.broadcast %16 : vector<1x32xf32> to vector<16x32xf32>
    %18 = arith.addf %15, %17 : vector<16x32xf32>
    %cst_13 = arith.constant 0.000000e+00 : f32
    %19 = vector.broadcast %cst_13 : f32 to vector<16x32xf32>
    %20 = arith.maximumf %18, %19 : vector<16x32xf32>
    %c0_14 = arith.constant 0 : index
    %c0_15 = arith.constant 0 : index
    %21 = vector.load %arg7[%c0_14, %c0_15] : memref<32x32xf32, #tpu.memory_space<vmem>>, vector<32x32xf32>
    %cst_16 = arith.constant dense<0.000000e+00> : vector<16x32xf32>
    %22 = tpu.matmul %20, %21, %cst_16 {dimension_numbers = #tpu.dot_dimension_numbers<[1], [0], [0], [1], [0, 0, 1, 1], [], []>} : vector<16x32xf32>, vector<32x32xf32>, vector<16x32xf32> -> vector<16x32xf32>
    %c0_17 = arith.constant 0 : index
    %c0_18 = arith.constant 0 : index
    %23 = vector.load %arg8[%c0_17, %c0_18] : memref<1x32xf32, #tpu.memory_space<vmem>>, vector<1x32xf32>
    %24 = vector.broadcast %23 : vector<1x32xf32> to vector<16x32xf32>
    %25 = arith.addf %22, %24 : vector<16x32xf32>
    %c0_19 = arith.constant 0 : index
    %c0_20 = arith.constant 0 : index
    %26 = vector.load %arg9[%c0_19, %c0_20] : memref<16x32xf32, #tpu.memory_space<vmem>>, vector<16x32xf32>
    tpu.vector_store %arg9[%c0_19, %c0_20], %25 {strides = array<i32>} : memref<16x32xf32, #tpu.memory_space<vmem>>, vector<16x32xf32>,
    return
  }
  func.func @transform_0(%arg0: i32) -> (i32, i32) {
    %c0_i32 = arith.constant 0 : i32
    %c0_i32_0 = arith.constant 0 : i32
    return %arg0, %c0_i32 : i32, i32
  }
  func.func @transform_1(%arg0: i32) -> (i32, i32) {
    %c0_i32 = arith.constant 0 : i32
    %c0_i32_0 = arith.constant 0 : i32
    %c0_i32_1 = arith.constant 0 : i32
    return %c0_i32, %c0_i32_0 : i32, i32
  }
  func.func @transform_2(%arg0: i32) -> (i32, i32) {
    %c0_i32 = arith.constant 0 : i32
    %c0_i32_0 = arith.constant 0 : i32
    %c0_i32_1 = arith.constant 0 : i32
    return %c0_i32, %c0_i32_0 : i32, i32
  }
  func.func @transform_3(%arg0: i32) -> (i32, i32) {
    %c0_i32 = arith.constant 0 : i32
    %c0_i32_0 = arith.constant 0 : i32
    %c0_i32_1 = arith.constant 0 : i32
    return %c0_i32, %c0_i32_0 : i32, i32
  }
  func.func @transform_4(%arg0: i32) -> (i32, i32) {
    %c0_i32 = arith.constant 0 : i32
    %c0_i32_0 = arith.constant 0 : i32
    %c0_i32_1 = arith.constant 0 : i32
    return %c0_i32, %c0_i32_0 : i32, i32
  }
  func.func @transform_5(%arg0: i32) -> (i32, i32) {
    %c0_i32 = arith.constant 0 : i32
    %c0_i32_0 = arith.constant 0 : i32
    %c0_i32_1 = arith.constant 0 : i32
    return %c0_i32, %c0_i32_0 : i32, i32
  }
  func.func @transform_6(%arg0: i32) -> (i32, i32) {
    %c0_i32 = arith.constant 0 : i32
    %c0_i32_0 = arith.constant 0 : i32
    %c0_i32_1 = arith.constant 0 : i32
    return %c0_i32, %c0_i32_0 : i32, i32
  }
  func.func @transform_7(%arg0: i32) -> (i32, i32) {
    %c0_i32 = arith.constant 0 : i32
    %c0_i32_0 = arith.constant 0 : i32
    %c0_i32_1 = arith.constant 0 : i32
    return %c0_i32, %c0_i32_0 : i32, i32
  }
  func.func @transform_8(%arg0: i32) -> (i32, i32) {
    %c0_i32 = arith.constant 0 : i32
    %c0_i32_0 = arith.constant 0 : i32
    return %arg0, %c0_i32 : i32, i32
  }
}

</mosaic_0001>

<bundles_post_ra>
// kernel: tpu_custom_call.1
= control target key start
LH: loop header
LB: loop body
LE: loop exit
PB: predicated region body
PF: predicated region fallthrough
CT: control target
= control target key end

     0   :  { %vm40_vm0 = vcmask 1043456   ;;  %vm33_vm1 = vcmask 31744   ;;  %s1104_s0 = inlined_call_operand.vmem [shape: f32[16,4], index: 0, kind: input, shape index: {}]   ;;  %s1105_s1 = inlined_call_operand.vmem [shape: f32[4,64], index: 1, kind: input, shape index: {}]   ;;  %s1106_s2 = inlined_call_operand.vmem [shape: f32[1,64], index: 2, kind: input, shape index: {}]   ;;  %s1107_s3 = inlined_call_operand.vmem [shape: f32[1,64], index: 3, kind: input, shape index: {}]   ;;  %s1108_s4 = inlined_call_operand.vmem [shape: f32[64,32], index: 4, kind: input, shape index: {}]   ;;  %s1109_s5 = inlined_call_operand.vmem [shape: f32[1,32], index: 5, kind: input, shape index: {}]   ;;  %s1110_s6 = inlined_call_operand.vmem [shape: f32[32,32], index: 6, kind: input, shape index: {}]   ;;  %s1111_s7 = inlined_call_operand.vmem [shape: f32[1,32], index: 7, kind: input, shape index: {}]   ;;  %s1112_s8 = inlined_call_operand.hbm [shape: f32[16,32], index: 8, kind: output, shape index: {}]  }
   0x1   :  { %v32_v0 = vld [vmem:[%s1105_s1] sm:$0xf]  ;;  %v31_v2 = vld [vmem:[%s1104_s0 + $0x8] sm:$0xff] }
   0x2   :  { %v30_v1 = vld [vmem:[%s1104_s0] sm:$0xff]  ;;  %807 = vmatprep.subr.msk.mxu0 %vm40_vm0, %v32_v0 }
   0x3   :  { %809 = vmatprep.mubr.msk.f32.mxu0 %vm33_vm1, %v30_v1 }
   0x4   :  { %13 = vsyncpa [#allocation3], 0  ;;  %808 = vmatpush3.msk.msra.mxu0 %vm40_vm0, %v32_v0  ;;  %v552_v3 = vld [vmem:[%s1108_s4] sm:$0xff]  ;;  %v553_v4 = vld [vmem:[%s1108_s4 + $0x8] sm:$0xff]  ;;  %v916_v43 = vmov 683565275  }
   0x5   :  { %810 = vmatmul.mubr.msk.f32.vlgmr.msra.gmra.mrb[0].mxu0 %vm33_vm1, %v31_v2  ;;  %v554_v5 = vld [vmem:[%s1108_s4 + $0x10] sm:$0xff]  ;;  %v842_v6 = vpack.c.bf16 %v553_v4, %v552_v3  ;;  %v555_v7 = vld [vmem:[%s1108_s4 + $0x18] sm:$0xff]  ;;  %v556_v9 = vld [vmem:[%s1108_s4 + $0x20] sm:$0xff]  ;;  %v917_v47 = vmov 2475754826  }
   0x6   :  { %v846_v8 = vpack.c.bf16 %v555_v7, %v554_v5  ;;  %v557_v10 = vld [vmem:[%s1108_s4 + $0x28] sm:$0xff]  ;;  %v558_v12 = vld [vmem:[%s1108_s4 + $0x30] sm:$0xff]  ;;  %v559_v13 = vld [vmem:[%s1108_s4 + $0x38] sm:$0xff]  ;;  %v918_v49 = vmov 2131351028  }
   0x7   :  { %843 = vmatprep.subr.bf16.mxu1 %v842_v6  ;;  %v850_v11 = vpack.c.bf16 %v557_v10, %v556_v9  ;;  %v854_v14 = vpack.c.bf16 %v559_v13, %v558_v12  ;;  %v651_v15 = vld [vmem:[%s1110_s6] sm:$0xff]  ;;  %v652_v16 = vld [vmem:[%s1110_s6 + $0x8] sm:$0xff]  ;;  %v919_v51 = vmov 2102212464   ;;  %v920_v53 = vmov 920167782  }
   0x8   :  { %845 = vmatpush3.bf16.msra.mxu1 %v842_v6  ;;  %v858_v17 = vpack.c.bf16 %v652_v16, %v651_v15  ;;  %v765_v18 = vld [vmem:[%s1106_s2] ss:$0 sm:$0xff]  ;;  %v921_v60 = vmov 1326507024  }
   0x9   :  { %847 = vmatprep.subr.bf16.mxu1 %v846_v8 }
   0xa   :  { %859 = vmatprep.subr.bf16.mxu0 %v858_v17 }
   0xb   :  { %861 = vmatpush3.bf16.msra.mxu0 %v858_v17 }
   0xc   :  { %849 = vmatpush3.bf16.msra.mxu1 %v846_v8 }
   0xd   :  { %851 = vmatprep.subr.bf16.mxu1 %v850_v11 }
  0x10   :  { %853 = vmatpush3.bf16.msra.mxu1 %v850_v11 }
  0x11   :  { %855 = vmatprep.subr.bf16.mxu1 %v854_v14 }
  0x14   :  { %857 = vmatpush3.bf16.msra.mxu1 %v854_v14 }
  0xd8   :  { %v811_v19 = vpop.f32.mrb[0].mxu0 }
  0xd9   :  { %v1013_v20 = vmul.f32 %v811_v19, %v765_v18  ;;  %v110_v21 = vpop.f32.mrb[1].mxu0 }
  0xda   :  { %v1015_v22 = vmul.f32 %v765_v18, %v110_v21 }
  0xdb   :  { %v234_v23 = vand.u32 2147483647, %v1013_v20  ;;  %v237_v24 = vand.u32 2139095040, %v1013_v20  ;;  %vm236_vm0 = vcmp.lt.s32.totalorder %v1013_v20, 0 }
  0xdc   :  { %v133_v25 = vand.u32 2139095040, %v1015_v22  ;;  %v130_v28 = vand.u32 2147483647, %v1015_v22 }
  0xdd   :  { %v238_v26 = vshrl.u32 %v237_v24, 23  ;;  %v241_v27 = vand.u32 8388607, %v234_v23  ;;  %vm235_vm1 = vcmp.le.f32.partialorder %v234_v23, 0.7853982 }
  0xde   :  { %v134_v29 = vshrl.u32 %v133_v25, 23  ;;  %v1025_v34 = vand.u32 8388607, %v130_v28 }
  0xdf   :  { %v770_v30 = vadd.s32 4294967169, %v238_v26  ;;  %v242_v33 = vor.u32 8388608, %v241_v27 }
  0xe0   :  { %v766_v31 = vadd.s32 4294967169, %v134_v29  ;;  %v138_v41 = vor.u32 8388608, %v1025_v34 }
  0xe1   :  { %v244_v32 = vadd.s32 1, %v770_v30  ;;  %v1027_v40 = vshll.u32 %v242_v33, 8 }
  0xe2   :  { %v140_v35 = vadd.s32 1, %v766_v31 }
  0xe3   :  { %vm245_vm2 = vcmp.gt.s32.totalorder %v244_v32, 0 }
  0xe4   :  { %v246_v36 = vsel %vm245_vm2, %v244_v32, 0  ;;  %vm141_vm3 = vcmp.gt.s32.totalorder %v140_v35, 0 }
  0xe5   :  { %v247_v37 = vshrl.u32 %v246_v36, 5  ;;  %v248_v38 = vand.u32 31, %v246_v36  ;;  %v142_v39 = vsel %vm141_vm3, %v140_v35, 0  ;;  %v178_v35 = vshll.u32 %v138_v41, 8 }
  0xe6   :  { %v1030_v45 = vshrl.u32 %v142_v39, 5  ;;  %v144_v46 = vand.u32 31, %v142_v39  ;;  %vm132_vm3 = vcmp.lt.s32.totalorder %v1015_v22, 0 }
  0xe7   :  { %v249_v42 = vsub.s32 32, %v248_v38  ;;  %v251_v44 = vshll.u32 %v916_v43, %v248_v38  ;;  %v254_v48 = vshll.u32 %v917_v47, %v248_v38  ;;  %v257_v50 = vshll.u32 %v918_v49, %v248_v38 }
  0xe8   :  { %v260_v52 = vshll.u32 %v919_v51, %v248_v38  ;;  %v263_v54 = vshll.u32 %v920_v53, %v248_v38  ;;  %vm266_vm4 = vcmp.lt.s32.totalorder %v247_v37, 1  ;;  %vm267_vm5 = vcmp.lt.s32.totalorder %v247_v37, 2 }
  0xe9   :  { %v252_v55 = vshrl.u32 %v917_v47, %v249_v42  ;;  %v255_v56 = vshrl.u32 %v918_v49, %v249_v42  ;;  %v258_v57 = vshrl.u32 %v919_v51, %v249_v42  ;;  %v250_v58 = vshrl.u32 %v916_v43, %v249_v42 }
  0xea   :  { %v261_v59 = vshrl.u32 %v920_v53, %v249_v42  ;;  %v264_v61 = vshrl.u32 %v921_v60, %v249_v42  ;;  %v145_v1 = vsub.s32 32, %v144_v46  ;;  %vm268_vm6 = vcmp.lt.s32.totalorder %v247_v37, 3 }
  0xeb   :  { %v253_v62 = vor.u32 %v252_v55, %v251_v44  ;;  %v256_v63 = vor.u32 %v255_v56, %v254_v48  ;;  %v259_v0 = vor.u32 %v258_v57, %v257_v50  ;;  %vm269_vm7 = vcmp.lt.s32.totalorder %v247_v37, 4 }
  0xec   :  { %v262_v2 = vor.u32 %v261_v59, %v260_v52  ;;  %v265_v3 = vor.u32 %v264_v61, %v263_v54  ;;  %v147_v11 = vshll.u32 %v916_v43, %v144_v46  ;;  %v148_v14 = vshrl.u32 %v917_v47, %v145_v1 }
  0xed   :  { %v270_v4 = vsel %vm266_vm4, %v250_v58, %v253_v62  ;;  %v271_v5 = vsel %vm269_vm7, %v259_v0, 2102212464  ;;  %v274_v6 = vsel %vm266_vm4, %v253_v62, %v256_v63  ;;  %v278_v7 = vsel %vm266_vm4, %v256_v63, %v259_v0 }
  0xee   :  { %v272_v8 = vsel %vm268_vm6, %v256_v63, %v271_v5  ;;  %v275_v9 = vsel %vm269_vm7, %v262_v2, 920167782  ;;  %v279_v10 = vsel %vm269_vm7, %v265_v3, 1326507024  ;;  %v150_v15 = vshll.u32 %v917_v47, %v144_v46 }
  0xef   :  { %v276_v12 = vsel %vm268_vm6, %v259_v0, %v275_v9  ;;  %v280_v13 = vsel %vm268_vm6, %v262_v2, %v279_v10  ;;  %v273_v16 = vsel %vm267_vm5, %v270_v4, %v272_v8  ;;  %v151_v19 = vshrl.u32 %v918_v49, %v145_v1 }
  0xf0   :  { %v277_v17 = vsel %vm267_vm5, %v274_v6, %v276_v12  ;;  %v281_v18 = vsel %vm267_vm5, %v278_v7, %v280_v13  ;;  %v149_v27 = vor.u32 %v148_v14, %v147_v11  ;;  %v153_v30 = vshll.u32 %v918_v49, %v144_v46 }
  0xf1   :  { %v1039_v21 = vmul.u32.u64.low %v1027_v40, %v281_v18  ;;  %v1040_v24 = vmul.u32.u64.high %v1027_v40, %v281_v18, %v1039_v21  ;;  %v1043_v25 = vmul.u32.u64.low %v1027_v40, %v277_v17  ;;  %v1044_v26 = vmul.u32.u64.high %v1027_v40, %v277_v17, %v1043_v25 }
  0xf2   :  { %v152_v29 = vor.u32 %v151_v19, %v150_v15  ;;  %v154_v31 = vshrl.u32 %v919_v51, %v145_v1  ;;  %v156_v32 = vshll.u32 %v919_v51, %v144_v46  ;;  %v157_v33 = vshrl.u32 %v920_v53, %v145_v1 }
  0xf3   :  { %v160_v34 = vshrl.u32 %v921_v60, %v145_v1  ;;  %v289_v36 = vmul.u32 %v1027_v40, %v273_v16  ;;  %v146_v37 = vshrl.u32 %v916_v43, %v145_v1  ;;  %v159_v39 = vshll.u32 %v920_v53, %v144_v46 }
  0xf4   :  { %v155_v38 = vor.u32 %v154_v31, %v153_v30  ;;  %vm291_vm8 = vc.u32 %v1040_v24, %v1043_v25  ;;  %v292_v42 = vadd.s32 1, %v1044_v26  ;;  %v158_v44 = vor.u32 %v157_v33, %v156_v32 }
  0xf5   :  { %vm162_vm9 = vcmp.lt.s32.totalorder %v1030_v45, 1  ;;  %v161_v47 = vor.u32 %v160_v34, %v159_v39  ;;  %vm164_vm10 = vcmp.lt.s32.totalorder %v1030_v45, 3  ;;  %vm165_vm11 = vcmp.lt.s32.totalorder %v1030_v45, 4 }
  0xf6   :  { %v170_v48 = vsel %vm162_vm9, %v149_v27, %v152_v29  ;;  %v293_v41 = vsel %vm291_vm8, %v292_v42, %v1044_v26  ;;  %v167_v49 = vsel %vm165_vm11, %v155_v38, 2102212464  ;;  %v171_v40 = vsel %vm165_vm11, %v158_v44, 920167782 }
  0xf7   :  { %v174_v43 = vsel %vm162_vm9, %v152_v29, %v155_v38  ;;  %v294_v50 = vadd.s32 %v293_v41, %v289_v36  ;;  %vm163_vm12 = vcmp.lt.s32.totalorder %v1030_v45, 2  ;;  %v172_v46 = vsel %vm164_vm10, %v155_v38, %v171_v40  ;;  %v128_v40 = vld [vmem:[%s1107_s3] sm:$0x1] }
  0xf8   :  { %v175_v51 = vsel %vm165_vm11, %v161_v47, 1326507024  ;;  %v166_v52 = vsel %vm162_vm9, %v146_v37, %v149_v27  ;;  %v168_v53 = vsel %vm164_vm10, %v152_v29, %v167_v49  ;;  %v173_v54 = vsel %vm163_vm12, %v170_v48, %v172_v46 }
  0xf9   :  { %v176_v55 = vsel %vm164_vm10, %v158_v44, %v175_v51  ;;  %v295_v56 = vadd.s32 536870912, %v294_v50  ;;  %v1054_v58 = vmul.u32.u64.low %v178_v35, %v173_v54  ;;  %v1055_v59 = vmul.u32.u64.high %v178_v35, %v173_v54, %v1054_v58 }
  0xfa   :  { %v177_v57 = vsel %vm163_vm12, %v174_v43, %v176_v55  ;;  %v169_v63 = vsel %vm163_vm12, %v166_v52, %v168_v53  ;;  %v290_v15 = vadd.s32 %v1043_v25, %v1040_v24  ;;  %v545_v47 = vlaneseq }
  0xfb   :  { %v1057_v60 = vmul.u32.u64.low %v178_v35, %v177_v57  ;;  %v1058_v61 = vmul.u32.u64.high %v178_v35, %v177_v57, %v1057_v60  ;;  %v296_v62 = vshrl.u32 %v295_v56, 30  ;;  %v188_v1 = vadd.s32 1, %v1055_v59 }
  0xfc   :  { %v185_v45 = vmul.u32 %v178_v35, %v169_v63  ;;  %v546_v52 = vshrl.u32 %v545_v47, 7  ;;  %vm129_vm2 = vcmp.gt.f32.partialorder %v128_v40, 0.0  ;;  %vm131_vm4 = vcmp.le.f32.partialorder %v130_v28, 0.7853982 }
  0xfd   :  { %v297_v0 = vshll.u32 %v296_v62, 30  ;;  %vm187_vm13 = vc.u32 %v1058_v61, %v1054_v58  ;;  %v186_v36 = vadd.s32 %v1054_v58, %v1058_v61  ;;  %v320_v25 = vsub.s32 4, %v296_v62 }
  0xfe   :  { %v189_v3 = vsel %vm187_vm13, %v188_v1, %v1055_v59  ;;  %v547_v58 = vsub.s32 0, %v546_v52  ;;  %v922_v59 = vmov 0   ;;  %vm326_vm12 = vweird.f32 %v1013_v20 }
  0xff   :  { %v298_v2 = vsub.s32 %v294_v50, %v297_v0  ;;  %v190_v4 = vadd.s32 %v189_v3, %v185_v45  ;;  %v321_v50 = vsel %vm236_vm0, %v320_v25, %v296_v62  ;;  %v544_v60 = vsel %vm129_vm2, 1, %v922_v59 }
 0x100   :  { %v323_v55 = vsel %vm235_vm1, 0, %v321_v50  ;;  %v548_v0 = vrot.slane %v544_v60, %v547_v58 }
 0x101   :  { %v300_v5 = vsub.s32 0, %v298_v2  ;;  %v191_v6 = vadd.s32 536870912, %v190_v4  ;;  %v327_v61 = vadd.s32 3, %v323_v55 }
 0x102   :  { %vm549_vm5 = vcmp.eq.s32.totalorder %v548_v0, 1 }
 0x103   :  { %v771_v7 = vmin.u32 %v300_v5, %v298_v2  ;;  %v192_v8 = vshrl.u32 %v191_v6, 30  ;;  %v328_v45 = vand.u32 3, %v327_v61 }
 0x105   :  { %v302_v9 = vclz %v771_v7  ;;  %v193_v10 = vshll.u32 %v192_v8, 30  ;;  %v216_v57 = vsub.s32 4, %v192_v8  ;;  %vm333_vm6 = vcmp.eq.s32.totalorder %v328_v45, 2 }
 0x106   :  { %vm330_vm9 = vcmp.eq.s32.totalorder %v328_v45, 0  ;;  %vm329_vm10 = vcmp.lt.s32.totalorder %v328_v45, 2 }
 0x107   :  { %v772_v11 = vadd.s32 4294967294, %v302_v9  ;;  %v194_v12 = vsub.s32 %v190_v4, %v193_v10  ;;  %v217_v62 = vsel %vm132_vm3, %v216_v57, %v192_v8 }
 0x108   :  { %v219_v4 = vsel %vm131_vm4, 0, %v217_v62 }
 0x109   :  { %vm773_vm14 = vcmp.lt.s32.totalorder %v772_v11, 0  ;;  %v196_v14 = vsub.s32 0, %v194_v12  ;;  %v223_v9 = vadd.s32 3, %v219_v4 }
 0x10a   :  { %v305_v13 = vsel %vm773_vm14, 0, %v772_v11 }
 0x10b   :  { %v306_v16 = vsub.s32 32, %v305_v13  ;;  %v310_v17 = vsub.s32 4294967266, %v305_v13  ;;  %v767_v18 = vmin.u32 %v196_v14, %v194_v12  ;;  %v307_v19 = vshll.u32 %v298_v2, %v305_v13 }
 0x10c   :  { %v534_v2 = vand.u32 3, %v323_v55 }
 0x10d   :  { %v308_v21 = vshrl.u32 %v290_v15, %v306_v16  ;;  %v311_v26 = vadd.s32 127, %v310_v17  ;;  %v198_v27 = vclz %v767_v18  ;;  %v224_v16 = vand.u32 3, %v223_v9 }
 0x10e   :  { %vm536_vm7 = vcmp.eq.s32.totalorder %v534_v2, 0  ;;  %vm539_vm8 = vcmp.eq.s32.totalorder %v534_v2, 2  ;;  %vm535_vm11 = vcmp.lt.s32.totalorder %v534_v2, 2  ;;  %v431_v17 = vand.u32 3, %v219_v4 }
 0x10f   :  { %v309_v29 = vor.u32 %v308_v21, %v307_v19  ;;  %v312_v30 = vshll.u32 %v311_v26, 23  ;;  %v768_v31 = vadd.s32 4294967294, %v198_v27  ;;  %vm229_vm13 = vcmp.eq.s32.totalorder %v224_v16, 2 }
 0x110   :  { %vm436_vm14 = vcmp.eq.s32.totalorder %v431_v17, 2  ;;  %vm432_vm2 = vcmp.lt.s32.totalorder %v431_v17, 2 }
 0x111   :  { %v313_v32 = vor.u32 4788187, %v312_v30  ;;  %vm769_vm15 = vcmp.lt.s32.totalorder %v768_v31, 0  ;;  %v316_v34 = vcvt.s32.f32 %v309_v29 }
 0x112   :  { %v201_v35 = vsel %vm769_vm15, 0, %v768_v31  ;;  %vm226_vm15 = vcmp.eq.s32.totalorder %v224_v16, 0 }
 0x113   :  { %v314_v33 = vand.u32 2147483647, %v313_v32  ;;  %v202_v37 = vsub.s32 32, %v201_v35  ;;  %v206_v38 = vsub.s32 4294967266, %v201_v35  ;;  %v203_v39 = vshll.u32 %v194_v12, %v201_v35 }
 0x115   :  { %v317_v24 = vmul.f32 %v316_v34, %v314_v33  ;;  %v204_v42 = vshrl.u32 %v186_v36, %v202_v37  ;;  %v207_v44 = vadd.s32 127, %v206_v38  ;;  %v653_v37 = vld [vmem:[%s1110_s6 + $0x10] sm:$0xff]  ;;  %v654_v38 = vld [vmem:[%s1110_s6 + $0x18] sm:$0xff]  ;;  %s923_s6 = smov [#allocation2]  }
 0x116   :  { %s751_s15 = sshll.u32 %s923_s6, 4  ;;  %s752_s15 = int_to_ptr.vmem [resolvable:$true] %s751_s15 }
 0x117   :  { %v318_v48 = vxor.u32 2147483648, %v317_v24  ;;  %v205_v41 = vor.u32 %v204_v42, %v203_v39  ;;  %v208_v49 = vshll.u32 %v207_v44, 23  ;;  %p897_p1 = scmp.lt.s32.totalorder %s752_s15, %s752_s15 }
 0x119   :  { %v319_v43 = vsel %vm236_vm0, %v318_v48, %v317_v24  ;;  %v209_v51 = vor.u32 4788187, %v208_v49  ;;  %v212_v54 = vcvt.s32.f32 %v205_v41  ;;  %vm433_vm0 = vcmp.eq.s32.totalorder %v431_v17, 0  ;;  %v785_v41 = vld [vmem:[%s1111_s7] ss:$0 sm:$0xff] }
 0x11a   :  { %v322_v46 = vsel %vm235_vm1, %v1013_v20, %v319_v43  ;;  %vm225_vm1 = vcmp.lt.s32.totalorder %v224_v16, 2  ;;  %v862_v24 = vpack.c.bf16 %v654_v38, %v653_v37 }
 0x11b   :  { %884 = vcosq.f32 %v322_v46  ;;  %v210_v53 = vand.u32 2147483647, %v209_v51 }
 0x11c   :  { %886 = vsinq.f32 %v322_v46  ;;  %863 = vmatprep.subr.bf16.mxu0 %v862_v24 }
 0x11d   :  { %v213_v56 = vmul.f32 %v212_v54, %v210_v53  ;;  %865 = vmatpush3.bf16.msra.mxu0 %v862_v24 }
 0x11f   :  { %v214_v63 = vxor.u32 2147483648, %v213_v56 }
 0x121   :  { %v215_v23 = vsel %vm132_vm3, %v214_v63, %v213_v56  ;;  %vm222_vm3 = vweird.f32 %v1015_v22 }
 0x122   :  { %v218_v1 = vsel %vm131_vm4, %v1015_v22, %v215_v23  ;;  %vm567_vm4 = vcmask 523264   ;;  %v782_v22 = vld [vmem:[%s1109_s5] ss:$0 sm:$0xff]  ;;  %s892_s5 = scalar_lea.vmem %s752_s15, 256 }
 0x123   :  { %888 = vcosq.f32 %v218_v1  ;;  %p893_p0 = scmp.ne.s32.totalorder %s752_s15, %s892_s5  ;;  %p898_p2 = scmp.lt.s32.totalorder %s892_s5, %s892_s5 }
 0x124   :  { %890 = vsinq.f32 %v218_v1 }
 0x125   :  { %v885_v3 = vpop.eup %884  ;;  %p899_p3 = por %p898_p2, %p897_p1 }
 0x126   :  { %v887_v5 = vpop.eup %886  ;;  %v334_v6 = vxor.u32 2147483648, %v885_v3 }
 0x127   :  { %v331_v7 = vxor.u32 2147483648, %v887_v5  ;;  %p900_p4 = pnand %p899_p3, %p893_p0 }
 0x128   :  { %v335_v28 = vsel %vm333_vm6, %v334_v6, %v887_v5  ;;  %v541_v8 = vsel %vm539_vm8, %v334_v6, %v887_v5 }
 0x129   :  { %v332_v10 = vsel %vm330_vm9, %v885_v3, %v331_v7  ;;  %v538_v11 = vsel %vm536_vm7, %v885_v3, %v331_v7 }
 0x12a   :  { %v336_v12 = vsel %vm329_vm10, %v332_v10, %v335_v28  ;;  %v542_v13 = vsel %vm535_vm11, %v538_v11, %v541_v8 }
 0x12b   :  { %v337_v14 = vsel %vm326_vm12, nan, %v336_v12  ;;  %v543_v15 = vsel %vm326_vm12, nan, %v542_v13 }
 0x12c   :  { %v551_v18 = vsel %vm549_vm5, %v337_v14, %v543_v15 }
 0x12d   :  { %v889_v19 = vpop.eup %888 }
 0x12e   :  { %v891_v21 = vpop.eup %890  ;;  %v230_v26 = vxor.u32 2147483648, %v889_v19 }
 0x12f   :  { %v227_v27 = vxor.u32 2147483648, %v891_v21 }
 0x130   :  { %v231_v29 = vsel %vm229_vm13, %v230_v26, %v891_v21  ;;  %v438_v30 = vsel %vm436_vm14, %v230_v26, %v891_v21 }
 0x131   :  { %v228_v20 = vsel %vm226_vm15, %v889_v19, %v227_v27  ;;  %v435_v31 = vsel %vm433_vm0, %v889_v19, %v227_v27 }
 0x132   :  { %v232_v32 = vsel %vm225_vm1, %v228_v20, %v231_v29  ;;  %v439_v33 = vsel %vm432_vm2, %v435_v31, %v438_v30 }
 0x133   :  { %v233_v34 = vsel %vm222_vm3, nan, %v232_v32  ;;  %v440_v35 = vsel %vm222_vm3, nan, %v439_v33 }
 0x134   :  { %v550_v36 = vsel %vm549_vm5, %v233_v34, %v440_v35  ;;  %vm662_vm5 = vcmask 261120  }
 0x135   :  { %828 = vmatprep.mubr.msk.f32.mxu1 %vm567_vm4, %v550_v36 }
 0x136   :  { %829 = vmatmul.mubr.msk.f32.vlgmr.msra.gmra.mrb[0].mxu1 %vm567_vm4, %v551_v18 }
 0x209   :  { %v830_v25 = vpop.f32.mrb[0].mxu1 }
 0x20a   :  { %v646_v39 = vadd.f32 %v830_v25, %v782_v22  ;;  %v640_v42 = vpop.f32.mrb[1].mxu1 }
 0x20b   :  { %v641_v44 = vadd.f32 %v782_v22, %v640_v42 }
 0x20c   :  { %v650_v48 = vmax.f32 %v646_v39, 0.0 }
 0x20d   :  { %v649_v47 = vmax.f32 %v641_v44, 0.0 }
 0x20f   :  { %839 = vmatprep.mubr.msk.f32.mxu0 %vm662_vm5, %v649_v47 }
 0x210   :  { %840 = vmatmul.mubr.msk.f32.vlgmr.msra.gmra.mrb[2].mxu0 %vm662_vm5, %v650_v48 }
 0x2e3   :  { %v841_v49 = vpop.f32.mrb[2].mxu0 }
 0x2e4   :  { %v741_v40 = vadd.f32 %v841_v49, %v785_v41  ;;  %v735_v43 = vpop.f32.mrb[3].mxu0 }
 0x2e5   :  { %v736_v50 = vadd.f32 %v785_v41, %v735_v43 }
 0x2e6   :  { %745 = vst.msk [vmem:[#allocation2 + $0x8] sm:$0xff] %vm662_vm5, %v741_v40 }
 0x2e7   :  { %744 = vst.msk [vmem:[#allocation2] sm:$0xff] %vm662_vm5, %v736_v50 }
 0x2e8   :  { %903 = shalt.err (!%p900_p4)
}
 0x2e9   :  { %s904_s7 = scalar_lea.hbm %s1112_s8, 256 }
 0x2ea   :  { %p905_p5 = scmp.ne.s32.totalorder %s1112_s8, %s904_s7  ;;  %p908_p6 = scmp.lt.u32.totalorder %s904_s7, %s1112_s8 }
 0x2ec   :  { %p910_p7 = pnand %p908_p6, %p905_p5 }
 0x2ee   :  { %913 = shalt.err (!%p910_p7)
}
 0x2ef   :  { %s924_s21 = smov 128   ;;  %s925_s22 = smov 8  }
 0x2f0   :  { %757 = dma.vmem_to_hbm [thread:$0]  %s752_s15, 256, %s1112_s8, [#allocation3], %s924_s21, %s924_s21, %s925_s22  }
 0x2f1   :  { %914 = dma.done.wait [#allocation3], 256  }
 0x2f2   :  { %915 = vsyncadd [#allocation3], 4294967040 }
 0x2f3   :  { %761 = vsyncpa [#allocation3], 1 }

</bundles_post_ra>
